<compile_context>
chip_gen: v6e
topology: v6e:2x2x1
jax: 0.10.0
libtpu: 0.0.40
codegen_flags: <defaults>
</compile_context>

<pallas_src>
import jax
import jax.numpy as jnp
from jax.experimental import pallas as pl
from jax.experimental.pallas import tpu as pltpu

HIDDEN_DIM = 256
IN_DIM = 8
LN_EPS = 1e-5
DEFAULT_TILE_B = 8192      # rows per grid step (multiple of 8)
_LANES = 128               # vreg lane width (for VMEM padding arithmetic)
_VMEM_CAP_BYTES = 56 << 20 # stay under v7x's 64 MiB physical VMEM per TC


def clinical_encoder_kernel(x_ref, w_ref, b_ref, gamma_ref, beta_ref, o_ref):
    # Linear(8 -> H): tiny-K MXU matmul, f32 accumulation, bias broadcast.
    y = jnp.dot(x_ref[...], w_ref[...], preferred_element_type=jnp.float32)
    y = y + b_ref[...]

    # ReLU (VPU elementwise).
    y = jnp.maximum(y, 0.0)

    # LayerNorm over the hidden (last) dim — one-pass statistics: the two
    # reductions are independent so they pipeline back-to-back through the XLU.
    inv_h = 1.0 / y.shape[-1]
    mean = jnp.sum(y, axis=-1, keepdims=True) * inv_h          # (TB, 1)
    sumsq = jnp.sum(y * y, axis=-1, keepdims=True) * inv_h     # (TB, 1)
    # Clamp: E[y^2] - mean^2 can go slightly negative from cancellation in f32.
    var = jnp.maximum(sumsq - mean * mean, 0.0)
    rstd = jax.lax.rsqrt(var + LN_EPS)                         # EUP slot (free)

    # Un-folded affine: o = (y - mean) * (gamma * rstd) + beta  (4 VALU ops/vreg).
    grs = gamma_ref[...] * rstd

    # Dropout(0.3): inference semantics => identity.
    # TODO(synk): training-mode dropout would need pltpu.prng_seed/prng_random_bits
    # plus the 1/(1-p) scaling.
    o_ref[...] = ((y - mean) * grs + beta_ref[...]).astype(o_ref.dtype)


def _round_up8(v):
    return max(8, ((v + 7) // 8) * 8)


def clinical_encoder(x, w_t, b, gamma, beta, *, tile_b=DEFAULT_TILE_B,
                     out_dtype=jnp.bfloat16):
    B = x.shape[0]
    H = w_t.shape[1]

    tile_b = min(tile_b, B)
    # Guarantee >= 2 grid steps whenever B allows it, so the "parallel" batch axis
    # actually splits across both TensorCores on v7x (harmless on v5e/v6e).
    if B > 8:
        tile_b = min(tile_b, _round_up8(pl.cdiv(B, 2)))
    if tile_b != B:
        tile_b = _round_up8(tile_b)  # keep the sublane dimension a multiple of 8
    grid = (pl.cdiv(B, tile_b),)

    out_bytes = jnp.dtype(out_dtype).itemsize
    x_bytes = jnp.dtype(x.dtype).itemsize

    # VMEM budget: x block is lane-padded to 128 lanes (16x its payload); output
    # block is lane-dense.  Both are double-buffered by the pipeline.  Params
    # (W^T + 3 vectors, ~32 KiB) are negligible but covered by the headroom.
    x_block_vmem = tile_b * max(IN_DIM, _LANES) * x_bytes
    out_block_vmem = tile_b * H * out_bytes
    vmem_limit = 2 * (x_block_vmem + out_block_vmem) + (2 << 20)
    vmem_limit = min(max(vmem_limit, 8 << 20), _VMEM_CAP_BYTES)

    # Advisory cost: lets XLA schedule this as a memory-bound op in larger graphs.
    cost = pl.CostEstimate(
        flops=2 * B * IN_DIM * H,
        transcendentals=B,                       # one rsqrt per row
        bytes_accessed=B * IN_DIM * x_bytes + B * H * out_bytes
                       + (IN_DIM * H + 3 * H) * 4,
    )

    return pl.pallas_call(
        clinical_encoder_kernel,
        out_shape=jax.ShapeDtypeStruct((B, H), out_dtype),
        grid=grid,
        in_specs=[
            pl.BlockSpec((tile_b, IN_DIM), lambda i: (i, 0)),  # x: tiled over batch
            pl.BlockSpec((IN_DIM, H), lambda i: (0, 0)),       # W^T: resident
            pl.BlockSpec((1, H), lambda i: (0, 0)),            # bias: resident
            pl.BlockSpec((1, H), lambda i: (0, 0)),            # gamma: resident
            pl.BlockSpec((1, H), lambda i: (0, 0)),            # beta: resident
        ],
        out_specs=pl.BlockSpec((tile_b, H), lambda i: (i, 0)),
        compiler_params=pltpu.CompilerParams(
            dimension_semantics=("parallel",),
            vmem_limit_bytes=vmem_limit,
        ),
        cost_estimate=cost,
    )(x, w_t, b, gamma, beta)


def reference(x, w_t, b, gamma, beta):
    y = x @ w_t + b
    y = jnp.maximum(y, 0.0)
    mean = jnp.mean(y, axis=-1, keepdims=True)
    var = jnp.mean((y - mean) ** 2, axis=-1, keepdims=True)
    y = (y - mean) / jnp.sqrt(var + LN_EPS)
    return y * gamma + beta


if __name__ == "__main__":
    key = jax.random.PRNGKey(0)
    kx, kw, kb, kg, kbe, kx2 = jax.random.split(key, 6)

    # nn.Linear(8, 256): weight (256, 8), bias (256,) -> pre-transpose weight to (8, 256).
    bound = 1.0 / jnp.sqrt(IN_DIM)
    w = jax.random.uniform(kw, (HIDDEN_DIM, IN_DIM), jnp.float32, -bound, bound)
    b = jax.random.uniform(kb, (HIDDEN_DIM,), jnp.float32, -bound, bound)
    w_t = w.T                      # (8, 256)
    b2d = b.reshape(1, HIDDEN_DIM)

    # nn.LayerNorm(256): gamma ~ ones, beta ~ zeros (perturbed to exercise affine).
    gamma = jnp.ones((1, HIDDEN_DIM), jnp.float32) + 0.01 * jax.random.normal(
        kg, (1, HIDDEN_DIM), jnp.float32)
    beta = 0.01 * jax.random.normal(kbe, (1, HIDDEN_DIM), jnp.float32)

    # 1) Small batch (single grid step), f32 output.
    B = 8
    x = jax.random.normal(kx, (B, IN_DIM), dtype=jnp.float32)
    out = jax.block_until_ready(
        clinical_encoder(x, w_t, b2d, gamma, beta, out_dtype=jnp.float32))
    ref = reference(x, w_t, b2d, gamma, beta)
    assert out.shape == (B, HIDDEN_DIM)
    assert jnp.allclose(out, ref, atol=1e-3, rtol=1e-3), "mismatch vs reference (B=8)"

    # 2) Multi-step grid with a partial final tile (exercises batch tiling).
    B2 = 40
    x2 = jax.random.normal(kx2, (B2, IN_DIM), dtype=jnp.float32)
    out2 = jax.block_until_ready(
        clinical_encoder(x2, w_t, b2d, gamma, beta, tile_b=16, out_dtype=jnp.float32))
    ref2 = reference(x2, w_t, b2d, gamma, beta)
    assert out2.shape == (B2, HIDDEN_DIM)
    assert jnp.allclose(out2, ref2, atol=1e-3, rtol=1e-3), "mismatch vs reference (tiled)"

    # 3) Default path: bf16 output + automatic >=2-step tile cap (v7x split logic).
    out3 = jax.block_until_ready(clinical_encoder(x2, w_t, b2d, gamma, beta))
    assert out3.dtype == jnp.bfloat16
    assert jnp.allclose(out3.astype(jnp.float32), ref2, atol=5e-2, rtol=5e-2), \
        "mismatch vs reference (bf16 default)"

    print("KERNEL_OK")
</pallas_src>

<mosaic_0001>
module attributes {stable_mosaic.version = 11 : i64} {
  func.func @clinical_encoder_kernel(%arg0: i32, %arg1: memref<8x8xf32, #tpu.memory_space<vmem>>, %arg2: memref<8x256xf32, #tpu.memory_space<vmem>>, %arg3: memref<1x256xf32, #tpu.memory_space<vmem>>, %arg4: memref<1x256xf32, #tpu.memory_space<vmem>>, %arg5: memref<1x256xf32, #tpu.memory_space<vmem>>, %arg6: memref<8x256xf32, #tpu.memory_space<vmem>>) attributes {dimension_semantics = [#tpu.dimension_semantics<parallel>], iteration_bounds = array<i64: 1>, scalar_prefetch = 0 : i64, scratch_operands = 0 : i64, tpu.core_type = #tpu.core_type<tc>, window_params = [{transform_indices = @transform_0, window_bounds = array<i64: 8, 8>}, {pipeline_mode = #tpu.pipeline_mode<synchronous>, transform_indices = @transform_1, window_bounds = array<i64: 8, 256>}, {pipeline_mode = #tpu.pipeline_mode<synchronous>, transform_indices = @transform_2, window_bounds = array<i64: 1, 256>}, {pipeline_mode = #tpu.pipeline_mode<synchronous>, transform_indices = @transform_3, window_bounds = array<i64: 1, 256>}, {pipeline_mode = #tpu.pipeline_mode<synchronous>, transform_indices = @transform_4, window_bounds = array<i64: 1, 256>}, {transform_indices = @transform_5, window_bounds = array<i64: 8, 256>}]} {
    %c0 = arith.constant 0 : index
    %c0_0 = arith.constant 0 : index
    %0 = vector.load %arg1[%c0, %c0_0] : memref<8x8xf32, #tpu.memory_space<vmem>>, vector<8x8xf32>
    %c0_1 = arith.constant 0 : index
    %c0_2 = arith.constant 0 : index
    %1 = vector.load %arg2[%c0_1, %c0_2] : memref<8x256xf32, #tpu.memory_space<vmem>>, vector<8x256xf32>
    %cst = arith.constant dense<0.000000e+00> : vector<8x256xf32>
    %2 = tpu.matmul %0, %1, %cst {dimension_numbers = #tpu.dot_dimension_numbers<[1], [0], [0], [1], [0, 0, 1, 1], [], []>} : vector<8x8xf32>, vector<8x256xf32>, vector<8x256xf32> -> vector<8x256xf32>
    %c0_3 = arith.constant 0 : index
    %c0_4 = arith.constant 0 : index
    %3 = vector.load %arg3[%c0_3, %c0_4] : memref<1x256xf32, #tpu.memory_space<vmem>>, vector<1x256xf32>
    %4 = vector.broadcast %3 : vector<1x256xf32> to vector<8x256xf32>
    %5 = arith.addf %2, %4 : vector<8x256xf32>
    %cst_5 = arith.constant 0.000000e+00 : f32
    %6 = vector.broadcast %cst_5 : f32 to vector<8x256xf32>
    %7 = arith.maximumf %5, %6 : vector<8x256xf32>
    %cst_6 = arith.constant dense<0.000000e+00> : vector<8xf32>
    %8 = vector.multi_reduction <add>, %7, %cst_6 [1] : vector<8x256xf32> to vector<8xf32>
    %9 = vector.shape_cast %8 : vector<8xf32> to vector<8x1xf32>
    %cst_7 = arith.constant 3.906250e-03 : f32
    %10 = vector.broadcast %cst_7 : f32 to vector<8x1xf32>
    %11 = arith.mulf %9, %10 : vector<8x1xf32>
    %12 = arith.mulf %7, %7 : vector<8x256xf32>
    %cst_8 = arith.constant dense<0.000000e+00> : vector<8xf32>
    %13 = vector.multi_reduction <add>, %12, %cst_8 [1] : vector<8x256xf32> to vector<8xf32>
    %14 = vector.shape_cast %13 : vector<8xf32> to vector<8x1xf32>
    %cst_9 = arith.constant 3.906250e-03 : f32
    %15 = vector.broadcast %cst_9 : f32 to vector<8x1xf32>
    %16 = arith.mulf %14, %15 : vector<8x1xf32>
    %17 = arith.mulf %11, %11 : vector<8x1xf32>
    %18 = arith.subf %16, %17 : vector<8x1xf32>
    %cst_10 = arith.constant 0.000000e+00 : f32
    %19 = vector.broadcast %cst_10 : f32 to vector<8x1xf32>
    %20 = arith.maximumf %18, %19 : vector<8x1xf32>
    %cst_11 = arith.constant 9.99999974E-6 : f32
    %21 = vector.broadcast %cst_11 : f32 to vector<8x1xf32>
    %22 = arith.addf %20, %21 : vector<8x1xf32>
    %23 = math.rsqrt %22 : vector<8x1xf32>
    %c0_12 = arith.constant 0 : index
    %c0_13 = arith.constant 0 : index
    %24 = vector.load %arg4[%c0_12, %c0_13] : memref<1x256xf32, #tpu.memory_space<vmem>>, vector<1x256xf32>
    %25 = vector.broadcast %24 : vector<1x256xf32> to vector<8x256xf32>
    %26 = vector.broadcast %23 : vector<8x1xf32> to vector<8x256xf32>
    %27 = arith.mulf %25, %26 : vector<8x256xf32>
    %28 = vector.broadcast %11 : vector<8x1xf32> to vector<8x256xf32>
    %29 = arith.subf %7, %28 : vector<8x256xf32>
    %30 = arith.mulf %29, %27 : vector<8x256xf32>
    %c0_14 = arith.constant 0 : index
    %c0_15 = arith.constant 0 : index
    %31 = vector.load %arg5[%c0_14, %c0_15] : memref<1x256xf32, #tpu.memory_space<vmem>>, vector<1x256xf32>
    %32 = vector.broadcast %31 : vector<1x256xf32> to vector<8x256xf32>
    %33 = arith.addf %30, %32 : vector<8x256xf32>
    %c0_16 = arith.constant 0 : index
    %c0_17 = arith.constant 0 : index
    %34 = vector.load %arg6[%c0_16, %c0_17] : memref<8x256xf32, #tpu.memory_space<vmem>>, vector<8x256xf32>
    tpu.vector_store %arg6[%c0_16, %c0_17], %33 {strides = array<i32>} : memref<8x256xf32, #tpu.memory_space<vmem>>, vector<8x256xf32>,
    return
  }
  func.func @transform_0(%arg0: i32) -> (i32, i32) {
    %c0_i32 = arith.constant 0 : i32
    %c0_i32_0 = arith.constant 0 : i32
    return %arg0, %c0_i32 : i32, i32
  }
  func.func @transform_1(%arg0: i32) -> (i32, i32) {
    %c0_i32 = arith.constant 0 : i32
    %c0_i32_0 = arith.constant 0 : i32
    %c0_i32_1 = arith.constant 0 : i32
    return %c0_i32, %c0_i32_0 : i32, i32
  }
  func.func @transform_2(%arg0: i32) -> (i32, i32) {
    %c0_i32 = arith.constant 0 : i32
    %c0_i32_0 = arith.constant 0 : i32
    %c0_i32_1 = arith.constant 0 : i32
    return %c0_i32, %c0_i32_0 : i32, i32
  }
  func.func @transform_3(%arg0: i32) -> (i32, i32) {
    %c0_i32 = arith.constant 0 : i32
    %c0_i32_0 = arith.constant 0 : i32
    %c0_i32_1 = arith.constant 0 : i32
    return %c0_i32, %c0_i32_0 : i32, i32
  }
  func.func @transform_4(%arg0: i32) -> (i32, i32) {
    %c0_i32 = arith.constant 0 : i32
    %c0_i32_0 = arith.constant 0 : i32
    %c0_i32_1 = arith.constant 0 : i32
    return %c0_i32, %c0_i32_0 : i32, i32
  }
  func.func @transform_5(%arg0: i32) -> (i32, i32) {
    %c0_i32 = arith.constant 0 : i32
    %c0_i32_0 = arith.constant 0 : i32
    return %arg0, %c0_i32 : i32, i32
  }
}

</mosaic_0001>

<bundles_post_ra>
// kernel: tpu_custom_call.1
= control target key start
LH: loop header
LB: loop body
LE: loop exit
PB: predicated region body
PF: predicated region fallthrough
CT: control target
= control target key end

     0   :  { %10 = vsyncpa [#allocation3], 0  ;;  %s327_s0 = inlined_call_operand.hbm [shape: f32[8,8], index: 0, kind: input, shape index: {}]   ;;  %s328_s1 = inlined_call_operand.hbm [shape: f32[8,256], index: 1, kind: input, shape index: {}]   ;;  %s329_s2 = inlined_call_operand.vmem [shape: f32[1,256], index: 2, kind: input, shape index: {}]   ;;  %s330_s3 = inlined_call_operand.vmem [shape: f32[1,256], index: 3, kind: input, shape index: {}]   ;;  %s331_s4 = inlined_call_operand.vmem [shape: f32[1,256], index: 4, kind: input, shape index: {}]   ;;  %s332_s5 = inlined_call_operand.hbm [shape: f32[8,256], index: 5, kind: output, shape index: {}]  }
   0x1   :  { %11 = vsyncpa [#allocation6], 0 }
   0x2   :  { %12 = vsyncpa [#allocation4], 0  ;;  %s275_s18 = smov [#allocation2]   ;;  %s276_s20 = smov [#allocation5]  }
   0x3   :  { %s19_s19 = sshll.u32 %s275_s18, 4  ;;  %s29_s21 = sshll.u32 %s276_s20, 4  ;;  %s20_s19 = int_to_ptr.vmem [resolvable:$true] %s19_s19  ;;  %s30_s21 = int_to_ptr.vmem [resolvable:$true] %s29_s21 }
   0x4   :  { %s217_s22 = scalar_lea.vmem %s20_s19, 128  ;;  %p222_p1 = scmp.lt.s32.totalorder %s20_s19, %s20_s19 }
   0x5   :  { %p218_p0 = scmp.ne.s32.totalorder %s20_s19, %s217_s22  ;;  %p223_p2 = scmp.lt.s32.totalorder %s217_s22, %s217_s22 }
   0x7   :  { %p224_p3 = por %p223_p2, %p222_p1 }
   0x9   :  { %p225_p4 = pnand %p224_p3, %p218_p0 }
   0xb   :  { %228 = shalt.err (!%p225_p4)
}
   0xc   :  { %22 = dma.hbm_to_vmem [thread:$0]  %s327_s0, 128, %s20_s19, [#allocation3]  }
   0xd   :  { %s237_s25 = scalar_lea.vmem %s30_s21, 256  ;;  %p242_p6 = scmp.lt.s32.totalorder %s30_s21, %s30_s21 }
   0xe   :  { %p238_p5 = scmp.ne.s32.totalorder %s30_s21, %s237_s25  ;;  %p243_p7 = scmp.lt.s32.totalorder %s237_s25, %s237_s25 }
  0x10   :  { %p244_p8 = por %p243_p7, %p242_p6 }
  0x12   :  { %p245_p9 = pnand %p244_p8, %p238_p5 }
  0x14   :  { %248 = shalt.err (!%p245_p9)
}
  0x15   :  { %32 = dma.hbm_to_vmem [thread:$0]  %s328_s1, 256, %s30_s21, [#allocation6]  }
  0x16   :  { %269 = dma.done.wait [#allocation3], 128  }
  0x17   :  { %270 = vsyncadd [#allocation3], 4294967168 }
  0x18   :  { %271 = dma.done.wait [#allocation6], 256  }
  0x19   :  { %272 = vsyncadd [#allocation6], 4294967040  ;;  %v277_v0 = vmov 0.0   ;;  %v47_v1 = vld [vmem:[#allocation5 + $0x8] sm:$0xff]  ;;  %v46_v2 = vld [vmem:[#allocation5] sm:$0xff]  ;;  %vm60_vm0 = vcmask 64512   ;;  %v50_v4 = vlaneseq }
  0x1a   :  { %128 = vmatprep.mubr.f32.mxu0 %v277_v0  ;;  %v45_v3 = vld [vmem:[#allocation2] sm:$0xff]  ;;  %94 = vmatprep.subr.mxu0 %v47_v1  ;;  %s278_s6 = smov [#allocation7]  }
  0x1b   :  { %95 = vmatpush1.msra.mxu0 %v46_v2  ;;  %v51_v5 = vshrl.u32 %v50_v4, 7  ;;  %v48_v7 = vld [vmem:[%s329_s2] sm:$0x3]  ;;  %s192_s7 = sshll.u32 %s278_s6, 4  ;;  %s193_s7 = int_to_ptr.vmem [resolvable:$true] %s192_s7 }
  0x1c   :  { %202 = vmatmul.mubr.msk.f32.vlgmr.msra.gmra.mxu0 %vm60_vm0, %v45_v3  ;;  %v152_v29 = vld [vmem:[%s330_s3] sm:$0x3]  ;;  %s249_s3 = scalar_lea.vmem %s193_s7, 256  ;;  %p254_p11 = scmp.lt.s32.totalorder %s193_s7, %s193_s7 }
  0x1d   :  { %v52_v6 = vsub.s32 0, %v51_v5  ;;  %v56_v8 = vsub.s32 1, %v51_v5  ;;  %v170_v32 = vld [vmem:[%s331_s4] sm:$0x3]  ;;  %p250_p10 = scmp.ne.s32.totalorder %s193_s7, %s249_s3  ;;  %p255_p12 = scmp.lt.s32.totalorder %s249_s3, %s249_s3 }
  0x1f   :  { %v53_v9 = vrot.slane %v48_v7, %v52_v6  ;;  %v57_v10 = vrot.slane %v48_v7, %v56_v8  ;;  %v157_v30 = vrot.slane %v152_v29, %v52_v6  ;;  %v161_v31 = vrot.slane %v152_v29, %v56_v8  ;;  %p256_p13 = por %p255_p12, %p254_p11 }
  0x20   :  { %v175_v34 = vrot.slane %v170_v32, %v52_v6  ;;  %v179_v35 = vrot.slane %v170_v32, %v56_v8 }
  0x21   :  { %p257_p0 = pnand %p256_p13, %p250_p10 }
  0xdc   :  { %v130_v11 = vpop.f32.mrf.mxu0 }
  0xdd   :  { %v131_v12 = vadd.f32 %v130_v11, %v53_v9 }
  0xde   :  { %v132_v13 = vpop.f32.mrf.mxu0 }
  0xdf   :  { %v133_v14 = vadd.f32 %v132_v13, %v57_v10  ;;  %v135_v15 = vmax.f32 %v131_v12, 0.0 }
  0xe1   :  { %v136_v16 = vmax.f32 %v133_v14, 0.0  ;;  %v141_v19 = vmul.f32 %v135_v15, %v135_v15 }
  0xe3   :  { %v137_v17 = vadd.f32 %v136_v16, %v135_v15  ;;  %v142_v18 = vmul.f32 %v136_v16, %v136_v16 }
  0xe5   :  { %138 = vadd.xlane.f32.xlu0 %v137_v17  ;;  %v143_v20 = vadd.f32 %v142_v18, %v141_v19 }
  0xe9   :  { %144 = vadd.xlane.f32.xlu0 %v143_v20 }
 0x16e   :  { %v139_v21 = vpop.xlane.xlu0 %138 }
 0x16f   :  { %v140_v22 = vmul.f32 0.00390625, %v139_v21 }
 0x171   :  { %v147_v24 = vmul.f32 %v140_v22, %v140_v22  ;;  %v166_v36 = vsub.f32 %v135_v15, %v140_v22  ;;  %v167_v37 = vsub.f32 %v136_v16, %v140_v22 }
 0x172   :  { %v145_v23 = vpop.xlane.xlu0 %144 }
 0x173   :  { %v146_v25 = vmul.f32 0.00390625, %v145_v23 }
 0x175   :  { %v148_v26 = vsub.f32 %v146_v25, %v147_v24 }
 0x177   :  { %v149_v27 = vmax.f32 %v148_v26, 0.0 }
 0x179   :  { %v150_v28 = vadd.f32 1e-05, %v149_v27 }
 0x17b   :  { %207 = vrsqrt.f32 %v150_v28 }
 0x188   :  { %v208_v33 = vpop.eup %207 }
 0x189   :  { %v164_v38 = vmul.f32 %v208_v33, %v157_v30  ;;  %v165_v39 = vmul.f32 %v208_v33, %v161_v31 }
 0x18b   :  { %v168_v40 = vmul.f32 %v166_v36, %v164_v38  ;;  %v169_v41 = vmul.f32 %v167_v37, %v165_v39 }
 0x18d   :  { %v182_v42 = vadd.f32 %v175_v34, %v168_v40  ;;  %v183_v43 = vadd.f32 %v179_v35, %v169_v41 }
 0x18f   :  { %184 = vst [vmem:[#allocation7] sm:$0xff] %v182_v42  ;;  %185 = vst [vmem:[#allocation7 + $0x8] sm:$0xff] %v183_v43 }
 0x190   :  { %260 = shalt.err (!%p257_p0)
}
 0x191   :  { %195 = dma.vmem_to_hbm [thread:$0]  %s193_s7, 256, %s332_s5, [#allocation4]  }
 0x192   :  { %273 = dma.done.wait [#allocation4], 256  }
 0x193   :  { %274 = vsyncadd [#allocation4], 4294967040 }
 0x194   :  { %199 = vsyncpa [#allocation3], 1 }
 0x195   :  { %200 = vsyncpa [#allocation6], 1 }
 0x196   :  { %201 = vsyncpa [#allocation4], 1 }

</bundles_post_ra>
